<compile_context>
chip_gen: v5e
topology: v5e:2x2
jax: 0.10.0
libtpu: 0.0.40
codegen_flags: <defaults>
</compile_context>

<pallas_src>
import jax
import jax.numpy as jnp
from jax.experimental import pallas as pl
from jax.experimental.pallas import tpu as pltpu


def _round_up(x, m):
    return ((x + m - 1) // m) * m


def critic_kernel(obs_ref, w1_ref, b1_ref, w2_ref, b2_ref, w3_ref, out_ref):
    """One batch tile of V(s) = W3p tanh(W2 tanh(W1 s + b1) + b2); b3 added in wrapper."""
    obs = obs_ref[...].astype(jnp.bfloat16)                       # (tb, obs_dim_p)
    h1 = jnp.tanh(
        jnp.dot(obs, w1_ref[...], preferred_element_type=jnp.float32) + b1_ref[...]
    )                                                             # (tb, hidden_p) f32
    h2 = jnp.tanh(
        jnp.dot(h1.astype(jnp.bfloat16), w2_ref[...],
                preferred_element_type=jnp.float32) + b2_ref[...]
    )                                                             # (tb, hidden_p) f32
    # Final projection folded into a lane-dense (hidden_p, 128) weight: only
    # column 0 is non-zero, so out[:, 0] is the value estimate.
    out_ref[...] = jnp.dot(h2.astype(jnp.bfloat16), w3_ref[...],
                           preferred_element_type=jnp.float32)    # (tb, 128)


def pack_params(params):
    """Pad params to 128-multiples and cast MXU weights to bf16 (done once)."""
    w1, b1, w2, b2, w3, b3 = params
    obs_dim, hidden = w1.shape
    obs_dim_p = _round_up(obs_dim, 128)
    hidden_p = _round_up(hidden, 128)

    w1p = jnp.zeros((obs_dim_p, hidden_p), jnp.bfloat16).at[:obs_dim, :hidden].set(
        w1.astype(jnp.bfloat16))
    b1p = jnp.zeros((1, hidden_p), jnp.float32).at[:, :hidden].set(b1)
    w2p = jnp.zeros((hidden_p, hidden_p), jnp.bfloat16).at[:hidden, :hidden].set(
        w2.astype(jnp.bfloat16))
    b2p = jnp.zeros((1, hidden_p), jnp.float32).at[:, :hidden].set(b2)
    # Fold the (hidden, 1) output head into a lane-dense 128-wide weight.
    w3p = jnp.zeros((hidden_p, 128), jnp.bfloat16).at[:hidden, :1].set(
        w3.astype(jnp.bfloat16))
    # b3 stays out of the kernel entirely (added in the wrapper).
    return (w1p, b1p, w2p, b2p, w3p, b3)


def critic_forward(obs, packed_params, *, max_tb=512):
    """obs: [B, obs_dim] f32. Returns value estimates [B, 1] f32."""
    w1, b1, w2, b2, w3, b3 = packed_params
    B, obs_dim = obs.shape
    obs_dim_p, hidden_p = w1.shape

    # Adaptive batch tile: single grid step for small B, 512-row tiles otherwise
    # (keeps >=2 parallel steps on large batches so both v7x TensorCores work).
    tb = _round_up(B, 8) if B <= max_tb else max_tb
    B_p = _round_up(B, tb)

    if B_p != B or obs_dim_p != obs_dim:
        obs_in = jnp.zeros((B_p, obs_dim_p), obs.dtype).at[:B, :obs_dim].set(obs)
    else:
        obs_in = obs

    grid = (B_p // tb,)
    # Weights/biases are small and have a constant block index (loaded once).
    full = lambda arr: pl.BlockSpec(arr.shape, lambda i: (0,) * arr.ndim)

    out = pl.pallas_call(
        critic_kernel,
        out_shape=jax.ShapeDtypeStruct((B_p, 128), jnp.float32),
        grid_spec=pltpu.PrefetchScalarGridSpec(
            num_scalar_prefetch=0,
            grid=grid,
            in_specs=[
                pl.BlockSpec((tb, obs_dim_p), lambda i: (i, 0)),  # obs tile
                full(w1), full(b1),
                full(w2), full(b2),
                full(w3),
            ],
            out_specs=pl.BlockSpec((tb, 128), lambda i: (i, 0)),  # lane-dense store
        ),
        compiler_params=pltpu.CompilerParams(
            dimension_semantics=("parallel",),
            vmem_limit_bytes=32 * 1024 * 1024,  # safe under v7x's 64 MiB physical VMEM
        ),
    )(obs_in, w1, b1, w2, b2, w3)

    return out[:B, :1] + b3                                       # (B, 1)


def init_params(key, obs_dim, hidden):
    """Deterministic synthetic parameters (no checkpoint loading)."""
    k1, k2, k3 = jax.random.split(key, 3)
    w1 = jax.random.normal(k1, (obs_dim, hidden), jnp.float32) * (1.0 / jnp.sqrt(obs_dim))
    b1 = jnp.zeros((1, hidden), jnp.float32)
    w2 = jax.random.normal(k2, (hidden, hidden), jnp.float32) * (1.0 / jnp.sqrt(hidden))
    b2 = jnp.zeros((1, hidden), jnp.float32)
    w3 = jax.random.normal(k3, (hidden, 1), jnp.float32) * (1.0 / jnp.sqrt(hidden))
    b3 = jnp.zeros((1, 1), jnp.float32)
    return (w1, b1, w2, b2, w3, b3)


def critic_reference(obs, params):
    """Pure-JAX f32 reference for correctness checking."""
    w1, b1, w2, b2, w3, b3 = params
    h1 = jnp.tanh(obs @ w1 + b1)
    h2 = jnp.tanh(h1 @ w2 + b2)
    return h2 @ w3 + b3


if __name__ == "__main__":
    key = jax.random.PRNGKey(0)
    k_obs, k_par = jax.random.split(key)

    batch, obs_dim, hidden = 16, 16, 32
    obs = jax.random.normal(k_obs, (batch, obs_dim), jnp.float32)
    params = init_params(k_par, obs_dim, hidden)
    packed = pack_params(params)

    values = critic_forward(obs, packed)
    values = jax.block_until_ready(values)

    ref = critic_reference(obs, params)
    assert values.shape == (batch, 1)
    # bf16 MXU operands vs f32 reference -> loosened tolerance.
    assert jnp.allclose(values, ref, atol=1e-1, rtol=1e-1), jnp.max(jnp.abs(values - ref))

    print("KERNEL_OK")
</pallas_src>

<mosaic_0001>
module attributes {stable_mosaic.version = 11 : i64} {
  func.func @critic_kernel(%arg0: i32, %arg1: memref<16x128xf32, #tpu.memory_space<vmem>>, %arg2: memref<128x128xbf16, #tpu.memory_space<vmem>>, %arg3: memref<1x128xf32, #tpu.memory_space<vmem>>, %arg4: memref<128x128xbf16, #tpu.memory_space<vmem>>, %arg5: memref<1x128xf32, #tpu.memory_space<vmem>>, %arg6: memref<128x128xbf16, #tpu.memory_space<vmem>>, %arg7: memref<16x128xf32, #tpu.memory_space<vmem>>) attributes {dimension_semantics = [#tpu.dimension_semantics<parallel>], iteration_bounds = array<i64: 1>, scalar_prefetch = 0 : i64, scratch_operands = 0 : i64, tpu.core_type = #tpu.core_type<tc>, window_params = [{transform_indices = @transform_0, window_bounds = array<i64: 16, 128>}, {pipeline_mode = #tpu.pipeline_mode<synchronous>, transform_indices = @transform_1, window_bounds = array<i64: 128, 128>}, {pipeline_mode = #tpu.pipeline_mode<synchronous>, transform_indices = @transform_2, window_bounds = array<i64: 1, 128>}, {pipeline_mode = #tpu.pipeline_mode<synchronous>, transform_indices = @transform_3, window_bounds = array<i64: 128, 128>}, {pipeline_mode = #tpu.pipeline_mode<synchronous>, transform_indices = @transform_4, window_bounds = array<i64: 1, 128>}, {pipeline_mode = #tpu.pipeline_mode<synchronous>, transform_indices = @transform_5, window_bounds = array<i64: 128, 128>}, {transform_indices = @transform_6, window_bounds = array<i64: 16, 128>}]} {
    %c0 = arith.constant 0 : index
    %c0_0 = arith.constant 0 : index
    %0 = vector.load %arg1[%c0, %c0_0] : memref<16x128xf32, #tpu.memory_space<vmem>>, vector<16x128xf32>
    %1 = arith.truncf %0 : vector<16x128xf32> to vector<16x128xbf16>
    %c0_1 = arith.constant 0 : index
    %c0_2 = arith.constant 0 : index
    %2 = vector.load %arg2[%c0_1, %c0_2] : memref<128x128xbf16, #tpu.memory_space<vmem>>, vector<128x128xbf16>
    %cst = arith.constant dense<0.000000e+00> : vector<16x128xf32>
    %3 = tpu.matmul %1, %2, %cst {dimension_numbers = #tpu.dot_dimension_numbers<[1], [0], [0], [1], [0, 0, 1, 1], [], []>} : vector<16x128xbf16>, vector<128x128xbf16>, vector<16x128xf32> -> vector<16x128xf32>
    %c0_3 = arith.constant 0 : index
    %c0_4 = arith.constant 0 : index
    %4 = vector.load %arg3[%c0_3, %c0_4] : memref<1x128xf32, #tpu.memory_space<vmem>>, vector<1x128xf32>
    %5 = vector.broadcast %4 : vector<1x128xf32> to vector<16x128xf32>
    %6 = arith.addf %3, %5 : vector<16x128xf32>
    %7 = math.tanh %6 : vector<16x128xf32>
    %8 = arith.truncf %7 : vector<16x128xf32> to vector<16x128xbf16>
    %c0_5 = arith.constant 0 : index
    %c0_6 = arith.constant 0 : index
    %9 = vector.load %arg4[%c0_5, %c0_6] : memref<128x128xbf16, #tpu.memory_space<vmem>>, vector<128x128xbf16>
    %cst_7 = arith.constant dense<0.000000e+00> : vector<16x128xf32>
    %10 = tpu.matmul %8, %9, %cst_7 {dimension_numbers = #tpu.dot_dimension_numbers<[1], [0], [0], [1], [0, 0, 1, 1], [], []>} : vector<16x128xbf16>, vector<128x128xbf16>, vector<16x128xf32> -> vector<16x128xf32>
    %c0_8 = arith.constant 0 : index
    %c0_9 = arith.constant 0 : index
    %11 = vector.load %arg5[%c0_8, %c0_9] : memref<1x128xf32, #tpu.memory_space<vmem>>, vector<1x128xf32>
    %12 = vector.broadcast %11 : vector<1x128xf32> to vector<16x128xf32>
    %13 = arith.addf %10, %12 : vector<16x128xf32>
    %14 = math.tanh %13 : vector<16x128xf32>
    %15 = arith.truncf %14 : vector<16x128xf32> to vector<16x128xbf16>
    %c0_10 = arith.constant 0 : index
    %c0_11 = arith.constant 0 : index
    %16 = vector.load %arg6[%c0_10, %c0_11] : memref<128x128xbf16, #tpu.memory_space<vmem>>, vector<128x128xbf16>
    %cst_12 = arith.constant dense<0.000000e+00> : vector<16x128xf32>
    %17 = tpu.matmul %15, %16, %cst_12 {dimension_numbers = #tpu.dot_dimension_numbers<[1], [0], [0], [1], [0, 0, 1, 1], [], []>} : vector<16x128xbf16>, vector<128x128xbf16>, vector<16x128xf32> -> vector<16x128xf32>
    %c0_13 = arith.constant 0 : index
    %c0_14 = arith.constant 0 : index
    %18 = vector.load %arg7[%c0_13, %c0_14] : memref<16x128xf32, #tpu.memory_space<vmem>>, vector<16x128xf32>
    tpu.vector_store %arg7[%c0_13, %c0_14], %17 {strides = array<i32>} : memref<16x128xf32, #tpu.memory_space<vmem>>, vector<16x128xf32>,
    return
  }
  func.func @transform_0(%arg0: i32) -> (i32, i32) {
    %c0_i32 = arith.constant 0 : i32
    %c0_i32_0 = arith.constant 0 : i32
    return %arg0, %c0_i32 : i32, i32
  }
  func.func @transform_1(%arg0: i32) -> (i32, i32) {
    %c0_i32 = arith.constant 0 : i32
    %c0_i32_0 = arith.constant 0 : i32
    %c0_i32_1 = arith.constant 0 : i32
    return %c0_i32, %c0_i32_0 : i32, i32
  }
  func.func @transform_2(%arg0: i32) -> (i32, i32) {
    %c0_i32 = arith.constant 0 : i32
    %c0_i32_0 = arith.constant 0 : i32
    %c0_i32_1 = arith.constant 0 : i32
    return %c0_i32, %c0_i32_0 : i32, i32
  }
  func.func @transform_3(%arg0: i32) -> (i32, i32) {
    %c0_i32 = arith.constant 0 : i32
    %c0_i32_0 = arith.constant 0 : i32
    %c0_i32_1 = arith.constant 0 : i32
    return %c0_i32, %c0_i32_0 : i32, i32
  }
  func.func @transform_4(%arg0: i32) -> (i32, i32) {
    %c0_i32 = arith.constant 0 : i32
    %c0_i32_0 = arith.constant 0 : i32
    %c0_i32_1 = arith.constant 0 : i32
    return %c0_i32, %c0_i32_0 : i32, i32
  }
  func.func @transform_5(%arg0: i32) -> (i32, i32) {
    %c0_i32 = arith.constant 0 : i32
    %c0_i32_0 = arith.constant 0 : i32
    %c0_i32_1 = arith.constant 0 : i32
    return %c0_i32, %c0_i32_0 : i32, i32
  }
  func.func @transform_6(%arg0: i32) -> (i32, i32) {
    %c0_i32 = arith.constant 0 : i32
    %c0_i32_0 = arith.constant 0 : i32
    return %arg0, %c0_i32 : i32, i32
  }
}

</mosaic_0001>

<bundles_post_ra>
// kernel: tpu_custom_call.1
= control target key start
LH: loop header
LB: loop body
LE: loop exit
PB: predicated region body
PF: predicated region fallthrough
CT: control target
= control target key end

     0   :  { %11 = vsyncpa [#allocation3], 0  ;;  %s699_s0 = inlined_call_operand.hbm [shape: f32[16,128], index: 0, kind: input, shape index: {}]   ;;  %s700_s1 = inlined_call_operand.hbm [shape: bf16[128,128], index: 1, kind: input, shape index: {}]   ;;  %s701_s2 = inlined_call_operand.vmem [shape: f32[1,128], index: 2, kind: input, shape index: {}]   ;;  %s702_s3 = inlined_call_operand.hbm [shape: bf16[128,128], index: 3, kind: input, shape index: {}]   ;;  %s703_s4 = inlined_call_operand.vmem [shape: f32[1,128], index: 4, kind: input, shape index: {}]   ;;  %s704_s5 = inlined_call_operand.hbm [shape: bf16[128,128], index: 5, kind: input, shape index: {}]   ;;  %s705_s6 = inlined_call_operand.hbm [shape: f32[16,128], index: 6, kind: output, shape index: {}]  }
   0x1   :  { %12 = vsyncpa [#allocation6], 0 }
   0x2   :  { %13 = vsyncpa [#allocation9], 0  ;;  %s32_s23 = sshll.u32 %s700_s1, 4  ;;  %s33_s23 = int_to_ptr.hbm [resolvable:$true] %s32_s23 }
   0x3   :  { %14 = vsyncpa [#allocation4], 0  ;;  %s628_s24 = smov [#allocation5]   ;;  %s19_s28 = sshll.u32 %s699_s0, 4  ;;  %s20_s28 = int_to_ptr.hbm [resolvable:$true] %s19_s28 }
   0x4   :  { %s34_s25 = sshll.u32 %s628_s24, 4  ;;  %s629_s29 = smov 64   ;;  %s35_s25 = int_to_ptr.vmem [resolvable:$true] %s34_s25 }
   0x5   :  { %s630_s30 = smov 4   ;;  %s631_s7 = smov [#allocation2]  }
   0x6   :  { %40 = dma.hbm_to_vmem [thread:$0]  %s33_s23, 1024, %s35_s25, [#allocation6], %s629_s29, %s629_s29, %s630_s30  }
   0x7   :  { %s21_s8 = sshll.u32 %s631_s7, 4  ;;  %s632_s9 = smov 128   ;;  %s22_s8 = int_to_ptr.vmem [resolvable:$true] %s21_s8 }
   0x8   :  { %s633_s10 = smov 8   ;;  %s47_s12 = sshll.u32 %s702_s3, 4  ;;  %s48_s12 = int_to_ptr.hbm [resolvable:$true] %s47_s12 }
   0x9   :  { %27 = dma.hbm_to_vmem [thread:$0]  %s20_s28, 256, %s22_s8, [#allocation3], %s632_s9, %s632_s9, %s633_s10  }
   0xa   :  { %s634_s13 = smov [#allocation7]   ;;  %s62_s16 = sshll.u32 %s704_s5, 4  ;;  %s63_s16 = int_to_ptr.hbm [resolvable:$true] %s62_s16 }
   0xb   :  { %s49_s0 = sshll.u32 %s634_s13, 4  ;;  %s635_s17 = smov [#allocation8]   ;;  %s50_s0 = int_to_ptr.vmem [resolvable:$true] %s49_s0 }
   0xc   :  { %55 = dma.hbm_to_vmem [thread:$0]  %s48_s12, 1024, %s50_s0, [#allocation6], %s629_s29, %s629_s29, %s630_s30  }
   0xd   :  { %s64_s18 = sshll.u32 %s635_s17, 4  ;;  %s65_s18 = int_to_ptr.vmem [resolvable:$true] %s64_s18 }
   0xe   :  { %70 = dma.hbm_to_vmem [thread:$0]  %s63_s16, 1024, %s65_s18, [#allocation9], %s629_s29, %s629_s29, %s630_s30  }
   0xf   :  { %620 = dma.done.wait [#allocation3], 256  }
  0x10   :  { %621 = vsyncadd [#allocation3], 4294967040 }
  0x11   :  { %622 = dma.done.wait [#allocation6], 2048  }
  0x12   :  { %623 = vsyncadd [#allocation6], 4294965248 }
  0x13   :  { %624 = dma.done.wait [#allocation9], 1024  }
  0x14   :  { %625 = vsyncadd [#allocation9], 4294966272  ;;  %v464_v0 = vld [vmem:[#allocation5 + $0x38] sm:$0xff]  ;;  %v463_v1 = vld [vmem:[#allocation5 + $0x30] sm:$0xff]  ;;  %s636_s20 = smov [#allocation10]   ;;  %s346_s24 = sshll.u32 %s705_s6, 4  ;;  %s347_s24 = int_to_ptr.hbm [resolvable:$true] %s346_s24 }
  0x15   :  { %158 = vmatpush.bf16.msra.mxu0 %v464_v0  ;;  %v472_v2 = vld [vmem:[#allocation7 + $0x38] sm:$0xff]  ;;  %v471_v3 = vld [vmem:[#allocation7 + $0x30] sm:$0xff]  ;;  %v462_v4 = vld [vmem:[#allocation5 + $0x28] sm:$0xff]  ;;  %s344_s21 = sshll.u32 %s636_s20, 4  ;;  %s345_s21 = int_to_ptr.vmem [resolvable:$true] %s344_s21 }
  0x16   :  { %243 = vmatpush.bf16.msra.mxu1 %v472_v2  ;;  %v470_v5 = vld [vmem:[#allocation7 + $0x28] sm:$0xff]  ;;  %v461_v6 = vld [vmem:[#allocation5 + $0x20] sm:$0xff]  ;;  %v460_v7 = vld [vmem:[#allocation5 + $0x18] sm:$0xff] }
  0x17   :  { %v459_v8 = vld [vmem:[#allocation5 + $0x10] sm:$0xff]  ;;  %v458_v9 = vld [vmem:[#allocation5 + $0x8] sm:$0xff]  ;;  %v457_v10 = vld [vmem:[#allocation5] sm:$0xff] }
  0x18   :  { %v87_v11 = vld [vmem:[#allocation2] sm:$0xff]  ;;  %v88_v12 = vld [vmem:[#allocation2 + $0x8] sm:$0xff]  ;;  %v469_v14 = vld [vmem:[#allocation7 + $0x20] sm:$0xff] }
  0x19   :  { %159 = vmatpush.bf16.msra.mxu0 %v463_v1  ;;  %v89_v13 = vpack.c.bf16 %v88_v12, %v87_v11  ;;  %v468_v15 = vld [vmem:[#allocation7 + $0x18] sm:$0xff]  ;;  %v467_v16 = vld [vmem:[#allocation7 + $0x10] sm:$0xff]  ;;  %v466_v17 = vld [vmem:[#allocation7 + $0x8] sm:$0xff] }
  0x1a   :  { %244 = vmatpush.bf16.msra.mxu1 %v471_v3  ;;  %v465_v18 = vld [vmem:[#allocation7] sm:$0xff]  ;;  %v480_v19 = vld [vmem:[#allocation8 + $0x38] sm:$0xff]  ;;  %v479_v20 = vld [vmem:[#allocation8 + $0x30] sm:$0xff] }
  0x1b   :  { %324 = vmatpush.bf16.msra.mxu2 %v480_v19  ;;  %v478_v21 = vld [vmem:[#allocation8 + $0x28] sm:$0xff]  ;;  %v490_v23 = vld [vmem:[%s701_s2] ss:$0 sm:$0xff]  ;;  %v477_v30 = vld [vmem:[#allocation8 + $0x20] sm:$0xff] }
  0x1c   :  { %v476_v31 = vld [vmem:[#allocation8 + $0x18] sm:$0xff]  ;;  %v475_v32 = vld [vmem:[#allocation8 + $0x10] sm:$0xff]  ;;  %v474_v33 = vld [vmem:[#allocation8 + $0x8] sm:$0xff] }
  0x1d   :  { %160 = vmatpush.bf16.msra.mxu0 %v462_v4  ;;  %v473_v34 = vld [vmem:[#allocation8] sm:$0xff]  ;;  %v491_v36 = vld [vmem:[%s703_s4] ss:$0 sm:$0xff] }
  0x1e   :  { %245 = vmatpush.bf16.msra.mxu1 %v470_v5 }
  0x1f   :  { %325 = vmatpush.bf16.msra.mxu2 %v479_v20 }
  0x21   :  { %161 = vmatpush.bf16.msra.mxu0 %v461_v6 }
  0x22   :  { %246 = vmatpush.bf16.msra.mxu1 %v469_v14 }
  0x23   :  { %326 = vmatpush.bf16.msra.mxu2 %v478_v21 }
  0x25   :  { %162 = vmatpush.bf16.msra.mxu0 %v460_v7 }
  0x26   :  { %247 = vmatpush.bf16.msra.mxu1 %v468_v15 }
  0x27   :  { %327 = vmatpush.bf16.msra.mxu2 %v477_v30 }
  0x29   :  { %163 = vmatpush.bf16.msra.mxu0 %v459_v8 }
  0x2a   :  { %248 = vmatpush.bf16.msra.mxu1 %v467_v16 }
  0x2b   :  { %328 = vmatpush.bf16.msra.mxu2 %v476_v31 }
  0x2d   :  { %164 = vmatpush.bf16.msra.mxu0 %v458_v9 }
  0x2e   :  { %249 = vmatpush.bf16.msra.mxu1 %v466_v17 }
  0x2f   :  { %329 = vmatpush.bf16.msra.mxu2 %v475_v32 }
  0x31   :  { %165 = vmatpush.bf16.msra.mxu0 %v457_v10 }
  0x32   :  { %250 = vmatpush.bf16.msra.mxu1 %v465_v18 }
  0x33   :  { %330 = vmatpush.bf16.msra.mxu2 %v474_v33 }
  0x34   :  { %166 = vmatmul.bf16.vlgmr.msra.gmra.mxu0 %v89_v13 }
  0x37   :  { %331 = vmatpush.bf16.msra.mxu2 %v473_v34 }
  0xb1   :  { %v167_v22 = vpop.f32.mrf.mxu0 }
  0xb2   :  { %v168_v24 = vadd.f32 %v490_v23, %v167_v22 }
  0xb4   :  { %492 = vtanh.f32 %v168_v24 }
  0xb9   :  { %v169_v25 = vpop.f32.mrf.mxu0 }
  0xba   :  { %v170_v26 = vadd.f32 %v490_v23, %v169_v25  ;;  %v493_v27 = vpop.eup %492 }
  0xbc   :  { %494 = vtanh.f32 %v170_v26 }
  0xc2   :  { %v495_v28 = vpop.eup %494 }
  0xc3   :  { %v174_v29 = vpack.c.bf16 %v495_v28, %v493_v27 }
  0xc5   :  { %251 = vmatmul.bf16.vlgmr.msra.gmra.mxu1 %v174_v29 }
 0x142   :  { %v252_v35 = vpop.f32.mrf.mxu1 }
 0x143   :  { %v253_v37 = vadd.f32 %v491_v36, %v252_v35 }
 0x145   :  { %496 = vtanh.f32 %v253_v37 }
 0x14a   :  { %v254_v38 = vpop.f32.mrf.mxu1 }
 0x14b   :  { %v255_v39 = vadd.f32 %v491_v36, %v254_v38  ;;  %v497_v40 = vpop.eup %496 }
 0x14d   :  { %498 = vtanh.f32 %v255_v39 }
 0x153   :  { %v499_v41 = vpop.eup %498 }
 0x154   :  { %v259_v42 = vpack.c.bf16 %v499_v41, %v497_v40 }
 0x156   :  { %332 = vmatmul.bf16.vlgmr.msra.gmra.mxu2 %v259_v42 }
 0x1d9   :  { %v333_v43 = vpop.f32.mrf.mxu2 }
 0x1da   :  { %338 = vst [vmem:[#allocation10] sm:$0xff] %v333_v43 }
 0x1e1   :  { %v335_v44 = vpop.f32.mrf.mxu2 }
 0x1e2   :  { %339 = vst [vmem:[#allocation10 + $0x8] sm:$0xff] %v335_v44 }
 0x1e3   :  { %352 = dma.vmem_to_hbm [thread:$0]  %s345_s21, 256, %s347_s24, [#allocation4], %s632_s9, %s632_s9, %s633_s10  }
 0x1e4   :  { %626 = dma.done.wait [#allocation4], 256  }
 0x1e5   :  { %627 = vsyncadd [#allocation4], 4294967040 }
 0x1e6   :  { %357 = vsyncpa [#allocation3], 1 }
 0x1e7   :  { %358 = vsyncpa [#allocation6], 1 }
 0x1e8   :  { %359 = vsyncpa [#allocation9], 1 }
 0x1e9   :  { %360 = vsyncpa [#allocation4], 1 }

</bundles_post_ra>
